<compile_context>
chip_gen: v7x
topology: tpu7x:2x2x1
jax: 0.10.0
libtpu: 0.0.40
codegen_flags: <defaults>
</compile_context>

<pallas_src>
import jax
import jax.numpy as jnp
from jax.experimental import pallas as pl
from jax.experimental.pallas import tpu as pltpu

LEAKY_RELU_NEGATIVE_SLOPE = 0.2
BN_EPS = 1e-5


# ---------------------------------------------------------------------------
# Fused kernel (whole MLP in one pallas_call)
# ---------------------------------------------------------------------------
def _make_fused_kernel(n_layers):
    """Builds a kernel: x_ref, [w,b,gamma,beta]*(n_layers-1), w_last, b_last, o_ref."""

    def kernel(*refs):
        x = refs[0][...]                       # (B, Din) f32
        idx = 1
        for _ in range(n_layers - 1):
            w = refs[idx][...]                 # (Din, Dout)
            b = refs[idx + 1][...]             # (1, Dout)
            gamma = refs[idx + 2][...]         # (1, Dout)
            beta = refs[idx + 3][...]          # (1, Dout)
            idx += 4

            # Linear (bias fused in the matmul epilogue).
            y = jnp.dot(x, w, preferred_element_type=jnp.float32) + b
            # LeakyReLU(0.2)
            y = jnp.where(y >= 0.0, y, LEAKY_RELU_NEGATIVE_SLOPE * y)

            # BatchNorm1d (training-mode batch stats), single reduction pass:
            #   mean = E[y],  var = E[y^2] - mean^2  (biased, as PyTorch uses
            #   for normalization in train()).  Fold normalize + affine into
            #   one per-feature scale/shift so the O(B*D) work is a single
            #   multiply-add per element.
            inv_b = 1.0 / y.shape[0]
            s1 = jnp.sum(y, axis=0, keepdims=True)          # (1, Dout)
            s2 = jnp.sum(y * y, axis=0, keepdims=True)      # (1, Dout)
            mean = s1 * inv_b
            var = jnp.maximum(s2 * inv_b - mean * mean, 0.0)
            scale = gamma * jax.lax.rsqrt(var + BN_EPS)     # (1, Dout)
            shift = beta - mean * scale                     # (1, Dout)
            x = y * scale + shift

        # Final layer: plain Linear (activ_func=None, norm_func=None).
        w = refs[idx][...]
        b = refs[idx + 1][...]
        o_ref = refs[idx + 2]
        o_ref[...] = jnp.dot(x, w, preferred_element_type=jnp.float32) + b

    return kernel


def _vmem_spec():
    return pl.BlockSpec(memory_space=pltpu.MemorySpace.VMEM)


def regressor_forward(x, params):
    """Forward pass of RegressorNetwork, fully fused into one Pallas kernel.

    params: list of (w, b, gamma, beta); gamma/beta are None for the last layer.
    """
    n_layers = len(params)
    B = x.shape[0]
    d_out_final = params[-1][0].shape[1]

    # Flatten inputs: x, then (w, b, gamma, beta) per hidden layer, (w, b) last.
    flat_inputs = [x]
    for i, (w, b, gamma, beta) in enumerate(params):
        if i < n_layers - 1:
            flat_inputs.extend([w, b, gamma, beta])
        else:
            flat_inputs.extend([w, b])

    # Cost estimate: matmul FLOPs + bytes moved, so XLA schedules the tiny
    # custom call without treating it as expensive.
    flops = 0
    param_elems = 0
    transcendentals = 0
    for i, (w, b, gamma, beta) in enumerate(params):
        d_in, d_out = w.shape
        flops += 2 * B * d_in * d_out
        param_elems += w.size + b.size
        if i < n_layers - 1:
            param_elems += gamma.size + beta.size
            transcendentals += d_out          # rsqrt per feature
    bytes_accessed = 4 * (x.size + param_elems + B * d_out_final)
    cost = pl.CostEstimate(
        flops=flops, transcendentals=transcendentals, bytes_accessed=bytes_accessed
    )

    return pl.pallas_call(
        _make_fused_kernel(n_layers),
        out_shape=jax.ShapeDtypeStruct((B, d_out_final), jnp.float32),
        in_specs=[_vmem_spec()] * len(flat_inputs),
        out_specs=_vmem_spec(),
        cost_estimate=cost,
    )(*flat_inputs)


# ---------------------------------------------------------------------------
# Parameter init (PyTorch-like uniform fan-in bound)
# ---------------------------------------------------------------------------
def init_params(key, layer_sizes):
    params = []
    n_layers = len(layer_sizes) - 1
    for i in range(n_layers):
        d_in, d_out = layer_sizes[i], layer_sizes[i + 1]
        key, kw, kb = jax.random.split(key, 3)
        bound = 1.0 / jnp.sqrt(d_in)
        w = jax.random.uniform(kw, (d_in, d_out), jnp.float32, -bound, bound)
        b = jax.random.uniform(kb, (1, d_out), jnp.float32, -bound, bound)
        if i < n_layers - 1:
            gamma = jnp.ones((1, d_out), jnp.float32)   # BatchNorm1d defaults
            beta = jnp.zeros((1, d_out), jnp.float32)
        else:
            gamma, beta = None, None
        params.append((w, b, gamma, beta))
    return params


# ---------------------------------------------------------------------------
# Reference (pure JAX) for a quick numerical sanity check
# ---------------------------------------------------------------------------
def _reference_forward(x, params):
    n_layers = len(params)
    for i, (w, b, gamma, beta) in enumerate(params):
        x = x @ w + b
        if i < n_layers - 1:
            x = jnp.where(x >= 0.0, x, LEAKY_RELU_NEGATIVE_SLOPE * x)
            mean = jnp.mean(x, axis=0, keepdims=True)
            var = jnp.mean((x - mean) ** 2, axis=0, keepdims=True)
            x = (x - mean) * jax.lax.rsqrt(var + BN_EPS) * gamma + beta
    return x


# ---------------------------------------------------------------------------
# Main
# ---------------------------------------------------------------------------
if __name__ == "__main__":
    layer_sizes = [32, 64, 64, 16]   # small MLP consistent with the module
    batch = 8

    key = jax.random.PRNGKey(0)
    key, kx = jax.random.split(key)
    x = jax.random.normal(kx, (batch, layer_sizes[0]), jnp.float32)

    params = init_params(key, layer_sizes)

    out = regressor_forward(x, params)
    out = jax.block_until_ready(out)

    assert out.shape == (batch, layer_sizes[-1])
    assert out.dtype == jnp.float32
    assert bool(jnp.all(jnp.isfinite(out)))

    ref = _reference_forward(x, params)
    assert bool(jnp.allclose(out, ref, atol=1e-4, rtol=1e-4))

    print("KERNEL_OK")
</pallas_src>

<mosaic_0001>
module attributes {stable_mosaic.version = 11 : i64} {
  func.func @kernel(%arg0: memref<8x32xf32, #tpu.memory_space<vmem>>, %arg1: memref<32x64xf32, #tpu.memory_space<vmem>>, %arg2: memref<1x64xf32, #tpu.memory_space<vmem>>, %arg3: memref<1x64xf32, #tpu.memory_space<vmem>>, %arg4: memref<1x64xf32, #tpu.memory_space<vmem>>, %arg5: memref<64x64xf32, #tpu.memory_space<vmem>>, %arg6: memref<1x64xf32, #tpu.memory_space<vmem>>, %arg7: memref<1x64xf32, #tpu.memory_space<vmem>>, %arg8: memref<1x64xf32, #tpu.memory_space<vmem>>, %arg9: memref<64x16xf32, #tpu.memory_space<vmem>>, %arg10: memref<1x16xf32, #tpu.memory_space<vmem>>, %arg11: memref<8x16xf32, #tpu.memory_space<vmem>>) attributes {dimension_semantics = [], scalar_prefetch = 0 : i64, scratch_operands = 0 : i64, tpu.core_type = #tpu.core_type<tc>} {
    %c0 = arith.constant 0 : index
    %c0_0 = arith.constant 0 : index
    %0 = vector.load %arg0[%c0, %c0_0] : memref<8x32xf32, #tpu.memory_space<vmem>>, vector<8x32xf32>
    %c0_1 = arith.constant 0 : index
    %c0_2 = arith.constant 0 : index
    %1 = vector.load %arg1[%c0_1, %c0_2] : memref<32x64xf32, #tpu.memory_space<vmem>>, vector<32x64xf32>
    %c0_3 = arith.constant 0 : index
    %c0_4 = arith.constant 0 : index
    %2 = vector.load %arg2[%c0_3, %c0_4] : memref<1x64xf32, #tpu.memory_space<vmem>>, vector<1x64xf32>
    %c0_5 = arith.constant 0 : index
    %c0_6 = arith.constant 0 : index
    %3 = vector.load %arg3[%c0_5, %c0_6] : memref<1x64xf32, #tpu.memory_space<vmem>>, vector<1x64xf32>
    %c0_7 = arith.constant 0 : index
    %c0_8 = arith.constant 0 : index
    %4 = vector.load %arg4[%c0_7, %c0_8] : memref<1x64xf32, #tpu.memory_space<vmem>>, vector<1x64xf32>
    %cst = arith.constant dense<0.000000e+00> : vector<8x64xf32>
    %5 = tpu.matmul %0, %1, %cst {dimension_numbers = #tpu.dot_dimension_numbers<[1], [0], [0], [1], [0, 0, 1, 1], [], []>} : vector<8x32xf32>, vector<32x64xf32>, vector<8x64xf32> -> vector<8x64xf32>
    %6 = vector.broadcast %2 : vector<1x64xf32> to vector<8x64xf32>
    %7 = arith.addf %5, %6 : vector<8x64xf32>
    %cst_9 = arith.constant 0.000000e+00 : f32
    %8 = vector.broadcast %cst_9 : f32 to vector<8x64xf32>
    %9 = arith.cmpf oge, %7, %8 : vector<8x64xf32>
    %cst_10 = arith.constant 2.000000e-01 : f32
    %10 = vector.broadcast %cst_10 : f32 to vector<8x64xf32>
    %11 = arith.mulf %10, %7 : vector<8x64xf32>
    %12 = arith.select %9, %7, %11 : vector<8x64xi1>, vector<8x64xf32>
    %cst_11 = arith.constant dense<0.000000e+00> : vector<64xf32>
    %13 = vector.multi_reduction <add>, %12, %cst_11 [0] : vector<8x64xf32> to vector<64xf32>
    %14 = vector.shape_cast %13 : vector<64xf32> to vector<1x64xf32>
    %15 = arith.mulf %12, %12 : vector<8x64xf32>
    %cst_12 = arith.constant dense<0.000000e+00> : vector<64xf32>
    %16 = vector.multi_reduction <add>, %15, %cst_12 [0] : vector<8x64xf32> to vector<64xf32>
    %17 = vector.shape_cast %16 : vector<64xf32> to vector<1x64xf32>
    %cst_13 = arith.constant 1.250000e-01 : f32
    %18 = vector.broadcast %cst_13 : f32 to vector<1x64xf32>
    %19 = arith.mulf %14, %18 : vector<1x64xf32>
    %cst_14 = arith.constant 1.250000e-01 : f32
    %20 = vector.broadcast %cst_14 : f32 to vector<1x64xf32>
    %21 = arith.mulf %17, %20 : vector<1x64xf32>
    %22 = arith.mulf %19, %19 : vector<1x64xf32>
    %23 = arith.subf %21, %22 : vector<1x64xf32>
    %cst_15 = arith.constant 0.000000e+00 : f32
    %24 = vector.broadcast %cst_15 : f32 to vector<1x64xf32>
    %25 = arith.maximumf %23, %24 : vector<1x64xf32>
    %cst_16 = arith.constant 9.99999974E-6 : f32
    %26 = vector.broadcast %cst_16 : f32 to vector<1x64xf32>
    %27 = arith.addf %25, %26 : vector<1x64xf32>
    %28 = math.rsqrt %27 : vector<1x64xf32>
    %29 = arith.mulf %3, %28 : vector<1x64xf32>
    %30 = arith.mulf %19, %29 : vector<1x64xf32>
    %31 = arith.subf %4, %30 : vector<1x64xf32>
    %32 = vector.broadcast %29 : vector<1x64xf32> to vector<8x64xf32>
    %33 = arith.mulf %12, %32 : vector<8x64xf32>
    %34 = vector.broadcast %31 : vector<1x64xf32> to vector<8x64xf32>
    %35 = arith.addf %33, %34 : vector<8x64xf32>
    %c0_17 = arith.constant 0 : index
    %c0_18 = arith.constant 0 : index
    %36 = vector.load %arg5[%c0_17, %c0_18] : memref<64x64xf32, #tpu.memory_space<vmem>>, vector<64x64xf32>
    %c0_19 = arith.constant 0 : index
    %c0_20 = arith.constant 0 : index
    %37 = vector.load %arg6[%c0_19, %c0_20] : memref<1x64xf32, #tpu.memory_space<vmem>>, vector<1x64xf32>
    %c0_21 = arith.constant 0 : index
    %c0_22 = arith.constant 0 : index
    %38 = vector.load %arg7[%c0_21, %c0_22] : memref<1x64xf32, #tpu.memory_space<vmem>>, vector<1x64xf32>
    %c0_23 = arith.constant 0 : index
    %c0_24 = arith.constant 0 : index
    %39 = vector.load %arg8[%c0_23, %c0_24] : memref<1x64xf32, #tpu.memory_space<vmem>>, vector<1x64xf32>
    %cst_25 = arith.constant dense<0.000000e+00> : vector<8x64xf32>
    %40 = tpu.matmul %35, %36, %cst_25 {dimension_numbers = #tpu.dot_dimension_numbers<[1], [0], [0], [1], [0, 0, 1, 1], [], []>} : vector<8x64xf32>, vector<64x64xf32>, vector<8x64xf32> -> vector<8x64xf32>
    %41 = vector.broadcast %37 : vector<1x64xf32> to vector<8x64xf32>
    %42 = arith.addf %40, %41 : vector<8x64xf32>
    %cst_26 = arith.constant 0.000000e+00 : f32
    %43 = vector.broadcast %cst_26 : f32 to vector<8x64xf32>
    %44 = arith.cmpf oge, %42, %43 : vector<8x64xf32>
    %cst_27 = arith.constant 2.000000e-01 : f32
    %45 = vector.broadcast %cst_27 : f32 to vector<8x64xf32>
    %46 = arith.mulf %45, %42 : vector<8x64xf32>
    %47 = arith.select %44, %42, %46 : vector<8x64xi1>, vector<8x64xf32>
    %cst_28 = arith.constant dense<0.000000e+00> : vector<64xf32>
    %48 = vector.multi_reduction <add>, %47, %cst_28 [0] : vector<8x64xf32> to vector<64xf32>
    %49 = vector.shape_cast %48 : vector<64xf32> to vector<1x64xf32>
    %50 = arith.mulf %47, %47 : vector<8x64xf32>
    %cst_29 = arith.constant dense<0.000000e+00> : vector<64xf32>
    %51 = vector.multi_reduction <add>, %50, %cst_29 [0] : vector<8x64xf32> to vector<64xf32>
    %52 = vector.shape_cast %51 : vector<64xf32> to vector<1x64xf32>
    %cst_30 = arith.constant 1.250000e-01 : f32
    %53 = vector.broadcast %cst_30 : f32 to vector<1x64xf32>
    %54 = arith.mulf %49, %53 : vector<1x64xf32>
    %cst_31 = arith.constant 1.250000e-01 : f32
    %55 = vector.broadcast %cst_31 : f32 to vector<1x64xf32>
    %56 = arith.mulf %52, %55 : vector<1x64xf32>
    %57 = arith.mulf %54, %54 : vector<1x64xf32>
    %58 = arith.subf %56, %57 : vector<1x64xf32>
    %cst_32 = arith.constant 0.000000e+00 : f32
    %59 = vector.broadcast %cst_32 : f32 to vector<1x64xf32>
    %60 = arith.maximumf %58, %59 : vector<1x64xf32>
    %cst_33 = arith.constant 9.99999974E-6 : f32
    %61 = vector.broadcast %cst_33 : f32 to vector<1x64xf32>
    %62 = arith.addf %60, %61 : vector<1x64xf32>
    %63 = math.rsqrt %62 : vector<1x64xf32>
    %64 = arith.mulf %38, %63 : vector<1x64xf32>
    %65 = arith.mulf %54, %64 : vector<1x64xf32>
    %66 = arith.subf %39, %65 : vector<1x64xf32>
    %67 = vector.broadcast %64 : vector<1x64xf32> to vector<8x64xf32>
    %68 = arith.mulf %47, %67 : vector<8x64xf32>
    %69 = vector.broadcast %66 : vector<1x64xf32> to vector<8x64xf32>
    %70 = arith.addf %68, %69 : vector<8x64xf32>
    %c0_34 = arith.constant 0 : index
    %c0_35 = arith.constant 0 : index
    %71 = vector.load %arg9[%c0_34, %c0_35] : memref<64x16xf32, #tpu.memory_space<vmem>>, vector<64x16xf32>
    %c0_36 = arith.constant 0 : index
    %c0_37 = arith.constant 0 : index
    %72 = vector.load %arg10[%c0_36, %c0_37] : memref<1x16xf32, #tpu.memory_space<vmem>>, vector<1x16xf32>
    %cst_38 = arith.constant dense<0.000000e+00> : vector<8x16xf32>
    %73 = tpu.matmul %70, %71, %cst_38 {dimension_numbers = #tpu.dot_dimension_numbers<[1], [0], [0], [1], [0, 0, 1, 1], [], []>} : vector<8x64xf32>, vector<64x16xf32>, vector<8x16xf32> -> vector<8x16xf32>
    %74 = vector.broadcast %72 : vector<1x16xf32> to vector<8x16xf32>
    %75 = arith.addf %73, %74 : vector<8x16xf32>
    %c0_39 = arith.constant 0 : index
    %c0_40 = arith.constant 0 : index
    %76 = vector.load %arg11[%c0_39, %c0_40] : memref<8x16xf32, #tpu.memory_space<vmem>>, vector<8x16xf32>
    tpu.vector_store %arg11[%c0_39, %c0_40], %75 {strides = array<i32>} : memref<8x16xf32, #tpu.memory_space<vmem>>, vector<8x16xf32>,
    return
  }
}

</mosaic_0001>

<bundles_post_ra>
// kernel: tpu_custom_call.1
= control target key start
LH: loop header
LB: loop body
LE: loop exit
PB: predicated region body
PF: predicated region fallthrough
CT: control target
= control target key end

     0   :  { %16 = vsyncpa [#allocation3], 0  ;;  %s963_s0 = inlined_call_operand.hbm [shape: f32[8,32], index: 0, kind: input, shape index: {}]   ;;  %s964_s1 = inlined_call_operand.vmem [shape: f32[32,64], index: 1, kind: input, shape index: {}]   ;;  %s965_s2 = inlined_call_operand.vmem [shape: f32[1,64], index: 2, kind: input, shape index: {}]   ;;  %s966_s3 = inlined_call_operand.vmem [shape: f32[1,64], index: 3, kind: input, shape index: {}]   ;;  %s967_s4 = inlined_call_operand.hbm [shape: f32[1,64], index: 4, kind: input, shape index: {}]   ;;  %s968_s5 = inlined_call_operand.vmem [shape: f32[64,64], index: 5, kind: input, shape index: {}]   ;;  %s969_s6 = inlined_call_operand.hbm [shape: f32[1,64], index: 6, kind: input, shape index: {}]   ;;  %s970_s7 = inlined_call_operand.hbm [shape: f32[1,64], index: 7, kind: input, shape index: {}]   ;;  %s971_s8 = inlined_call_operand.hbm [shape: f32[1,64], index: 8, kind: input, shape index: {}]   ;;  %s972_s9 = inlined_call_operand.vmem [shape: f32[64,16], index: 9, kind: input, shape index: {}]   ;;  %s973_s10 = inlined_call_operand.vmem [shape: f32[1,16], index: 10, kind: input, shape index: {}]   ;;  %s974_s11 = inlined_call_operand.hbm [shape: f32[8,16], index: 11, kind: output, shape index: {}]  }
   0x1   :  { %17 = vsyncpa [#allocation6], 0 }
   0x2   :  { %18 = vsyncpa [#allocation9], 0 }
   0x3   :  { %19 = vsyncpa [#allocation4], 0  ;;  %s728_s17 = smov [#allocation5]   ;;  %s729_s19 = smov [#allocation8]  }
   0x4   :  { %s42_s18 = sshll.u32 %s728_s17, 4  ;;  %s64_s20 = sshll.u32 %s729_s19, 4  ;;  %s43_s18 = int_to_ptr.vmem [resolvable:$true] %s42_s18  ;;  %s65_s20 = int_to_ptr.vmem [resolvable:$true] %s64_s20 }
   0x5   :  { %s588_s23 = scalar_lea.hbm %s967_s4, 16 }
   0x6   :  { %p589_p0 = scmp.ne.s32.totalorder %s967_s4, %s588_s23  ;;  %p592_p1 = scmp.lt.u32.totalorder %s588_s23, %s967_s4 }
   0x8   :  { %p594_p2 = pnand %p592_p1, %p589_p0 }
   0xa   :  { %597 = shalt.err (!%p594_p2)
}
   0xb   :  { %s598_s28 = scalar_lea.vmem %s43_s18, 16  ;;  %s602_s29 = scalar_lea.vmem %s43_s18, 32 }
   0xc   :  { %p599_p3 = scmp.ne.s32.totalorder %s43_s18, %s598_s28  ;;  %p603_p4 = scmp.lt.s32.totalorder %s43_s18, %s43_s18 }
   0xd   :  { %p604_p5 = scmp.lt.s32.totalorder %s602_s29, %s598_s28 }
   0xf   :  { %p605_p6 = por %p604_p5, %p603_p4 }
  0x11   :  { %p606_p7 = pnand %p605_p6, %p599_p3 }
  0x13   :  { %609 = shalt.err (!%p606_p7)
}
  0x14   :  { %45 = dma.hbm_to_vmem [thread:$0]  %s967_s4, 16, %s43_s18, [#allocation6]  }
  0x15   :  { %s610_s15 = scalar_lea.hbm %s970_s7, 16 }
  0x16   :  { %p611_p8 = scmp.ne.s32.totalorder %s970_s7, %s610_s15  ;;  %p614_p9 = scmp.lt.u32.totalorder %s610_s15, %s970_s7 }
  0x18   :  { %p616_p10 = pnand %p614_p9, %p611_p8 }
  0x1a   :  { %619 = shalt.err (!%p616_p10)
}
  0x1b   :  { %s620_s22 = scalar_lea.vmem %s65_s20, 16  ;;  %s624_s23 = scalar_lea.vmem %s65_s20, 32 }
  0x1c   :  { %p621_p11 = scmp.ne.s32.totalorder %s65_s20, %s620_s22  ;;  %p625_p12 = scmp.lt.s32.totalorder %s65_s20, %s65_s20 }
  0x1d   :  { %p626_p13 = scmp.lt.s32.totalorder %s624_s23, %s620_s22 }
  0x1f   :  { %p627_p0 = por %p626_p13, %p625_p12 }
  0x21   :  { %p628_p1 = pnand %p627_p0, %p621_p11 }
  0x23   :  { %631 = shalt.err (!%p628_p1)
}
  0x24   :  { %67 = dma.hbm_to_vmem [thread:$0]  %s970_s7, 16, %s65_s20, [#allocation9]  }
  0x25   :  { %s730_s24 = smov [#allocation2]   ;;  %s731_s26 = smov [#allocation7]  }
  0x26   :  { %s26_s25 = sshll.u32 %s730_s24, 4  ;;  %s54_s27 = sshll.u32 %s731_s26, 4  ;;  %s27_s25 = int_to_ptr.vmem [resolvable:$true] %s26_s25  ;;  %s55_s27 = int_to_ptr.vmem [resolvable:$true] %s54_s27 }
  0x27   :  { %s632_s30 = scalar_lea.hbm %s963_s0, 128 }
  0x28   :  { %p633_p2 = scmp.ne.s32.totalorder %s963_s0, %s632_s30  ;;  %p636_p3 = scmp.lt.u32.totalorder %s632_s30, %s963_s0 }
  0x2a   :  { %p638_p4 = pnand %p636_p3, %p633_p2 }
  0x2c   :  { %641 = shalt.err (!%p638_p4)
}
  0x2d   :  { %s642_s7 = scalar_lea.vmem %s27_s25, 128  ;;  %p647_p6 = scmp.lt.s32.totalorder %s27_s25, %s27_s25 }
  0x2e   :  { %p643_p5 = scmp.ne.s32.totalorder %s27_s25, %s642_s7  ;;  %p648_p7 = scmp.lt.s32.totalorder %s642_s7, %s642_s7 }
  0x30   :  { %p649_p8 = por %p648_p7, %p647_p6 }
  0x32   :  { %p650_p9 = pnand %p649_p8, %p643_p5 }
  0x34   :  { %653 = shalt.err (!%p650_p9)
}
  0x35   :  { %29 = dma.hbm_to_vmem [thread:$0]  %s963_s0, 128, %s27_s25, [#allocation3]  }
  0x36   :  { %s654_s21 = scalar_lea.hbm %s969_s6, 16 }
  0x37   :  { %p655_p10 = scmp.ne.s32.totalorder %s969_s6, %s654_s21  ;;  %p658_p11 = scmp.lt.u32.totalorder %s654_s21, %s969_s6 }
  0x39   :  { %p660_p12 = pnand %p658_p11, %p655_p10 }
  0x3b   :  { %663 = shalt.err (!%p660_p12)
}
  0x3c   :  { %s664_s24 = scalar_lea.vmem %s55_s27, 16  ;;  %s668_s26 = scalar_lea.vmem %s55_s27, 32 }
  0x3d   :  { %p665_p13 = scmp.ne.s32.totalorder %s55_s27, %s664_s24  ;;  %p669_p0 = scmp.lt.s32.totalorder %s55_s27, %s55_s27 }
  0x3e   :  { %p670_p1 = scmp.lt.s32.totalorder %s668_s26, %s664_s24 }
  0x40   :  { %p671_p2 = por %p670_p1, %p669_p0 }
  0x42   :  { %p672_p3 = pnand %p671_p2, %p665_p13 }
  0x44   :  { %675 = shalt.err (!%p672_p3)
}
  0x45   :  { %57 = dma.hbm_to_vmem [thread:$0]  %s969_s6, 16, %s55_s27, [#allocation6]  }
  0x46   :  { %s732_s28 = smov [#allocation10]   ;;  %s676_s13 = scalar_lea.hbm %s971_s8, 16 }
  0x47   :  { %s74_s29 = sshll.u32 %s732_s28, 4  ;;  %p677_p4 = scmp.ne.s32.totalorder %s971_s8, %s676_s13  ;;  %s75_s29 = int_to_ptr.vmem [resolvable:$true] %s74_s29 }
  0x48   :  { %p680_p5 = scmp.lt.u32.totalorder %s676_s13, %s971_s8 }
  0x4a   :  { %p682_p6 = pnand %p680_p5, %p677_p4 }
  0x4c   :  { %685 = shalt.err (!%p682_p6)
}
  0x4d   :  { %s686_s16 = scalar_lea.vmem %s75_s29, 16  ;;  %s690_s6 = scalar_lea.vmem %s75_s29, 32 }
  0x4e   :  { %p687_p7 = scmp.ne.s32.totalorder %s75_s29, %s686_s16  ;;  %p691_p8 = scmp.lt.s32.totalorder %s75_s29, %s75_s29 }
  0x4f   :  { %p692_p9 = scmp.lt.s32.totalorder %s690_s6, %s686_s16 }
  0x51   :  { %p693_p10 = por %p692_p9, %p691_p8 }
  0x53   :  { %p694_p11 = pnand %p693_p10, %p687_p7 }
  0x55   :  { %697 = shalt.err (!%p694_p11)
}
  0x56   :  { %77 = dma.hbm_to_vmem [thread:$0]  %s971_s8, 16, %s75_s29, [#allocation9]  }
  0x57   :  { %720 = dma.done.wait [#allocation3], 128  }
  0x58   :  { %721 = vsyncadd [#allocation3], 4294967168 }
  0x59   :  { %722 = dma.done.wait [#allocation6], 32  }
  0x5a   :  { %723 = vsyncadd [#allocation6], 4294967264 }
  0x5b   :  { %724 = dma.done.wait [#allocation9], 32  }
  0x5c   :  { %725 = vsyncadd [#allocation9], 4294967264  ;;  %v733_v0 = vmov 0.0|0.0   ;;  %vm734_vm0 = vmmov 0   ;;  %v735_v1 = vmov 0.0   ;;  %v98_v2 = vld [vmem:[%s964_s1] sm:$0xff]  ;;  %v215_v48 = vlaneseq }
  0x5d   :  { %545 = vmatprep.subr.bf16.mxu0 %v733_v0  ;;  %504 = vmatprep.mubr.msk.f32.mxu0 %vm734_vm0, %v735_v1  ;;  %v99_v3 = vld [vmem:[%s964_s1 + $0x8] sm:$0xff]  ;;  %v100_v4 = vld [vmem:[%s964_s1 + $0x10] sm:$0xff]  ;;  %v101_v6 = vld [vmem:[%s964_s1 + $0x18] sm:$0xff]  ;;  %vm111_vm1 = vcmask 261120   ;;  %vm188_vm3 = vcmask 523264   ;;  %s736_s14 = smov [#allocation11]  }
  0x5e   :  { %551 = vmatprep.subr.bf16.mxu1 %v733_v0  ;;  %523 = vmatprep.mubr.msk.f32.mxu1 %vm734_vm0, %v735_v1  ;;  %v546_v5 = vpack.c.bf16 %v99_v3, %v98_v2  ;;  %v549_v7 = vpack.c.bf16 %v101_v6, %v100_v4  ;;  %v97_v8 = vld [vmem:[#allocation2] sm:$0xff]  ;;  %v229_v10 = vld [vmem:[%s968_s5 + $0x8] sm:$0xff]  ;;  %v230_v12 = vld [vmem:[%s968_s5 + $0x10] sm:$0xff]  ;;  %v216_v49 = vshrl.u32 %v215_v48, 7  ;;  %s456_s15 = sshll.u32 %s736_s14, 4  ;;  %vm448_vm5 = vcmask 130048   ;;  %s457_s15 = int_to_ptr.vmem [resolvable:$true] %s456_s15 }
  0x5f   :  { %v228_v9 = vld [vmem:[%s968_s5] sm:$0xff]  ;;  %v231_v13 = vld [vmem:[%s968_s5 + $0x18] sm:$0xff]  ;;  %v233_v16 = vld [vmem:[%s968_s5 + $0x28] sm:$0xff]  ;;  %s698_s7 = scalar_lea.vmem %s457_s15, 128  ;;  %p703_p13 = scmp.lt.s32.totalorder %s457_s15, %s457_s15 }
  0x60   :  { %547 = vmatpush3.bf16.msra.mxu0 %v546_v5  ;;  %v552_v11 = vpack.c.bf16 %v229_v10, %v228_v9  ;;  %v555_v14 = vpack.c.bf16 %v231_v13, %v230_v12  ;;  %v232_v15 = vld [vmem:[%s968_s5 + $0x20] sm:$0xff]  ;;  %v234_v18 = vld [vmem:[%s968_s5 + $0x30] sm:$0xff]  ;;  %v235_v19 = vld [vmem:[%s968_s5 + $0x38] sm:$0xff]  ;;  %v911_v51 = vsub.s32 0, %v216_v49  ;;  %p699_p12 = scmp.ne.s32.totalorder %s457_s15, %s698_s7  ;;  %p704_p0 = scmp.lt.s32.totalorder %s698_s7, %s698_s7 }
  0x61   :  { %548 = vmatprep.subr.bf16.mxu0 %v733_v0  ;;  %v558_v17 = vpack.c.bf16 %v233_v16, %v232_v15  ;;  %v561_v20 = vpack.c.bf16 %v235_v19, %v234_v18  ;;  %v467_v21 = vld [vmem:[%s965_s2] ss:$0 sm:$0xff]  ;;  %v104_v54 = vld [vmem:[#allocation5] sm:$0x1]  ;;  %v363_v2 = vld [vmem:[%s972_s9 + $0x18] sm:$0xff] }
  0x62   :  { %553 = vmatpush3.bf16.msra.mxu1 %v552_v11  ;;  %v103_v50 = vld [vmem:[%s966_s3] sm:$0x1]  ;;  %v361_v62 = vld [vmem:[%s972_s9 + $0x8] sm:$0xff]  ;;  %p705_p1 = por %p704_p0, %p703_p13 }
  0x63   :  { %554 = vmatprep.subr.bf16.mxu1 %v733_v0  ;;  %v360_v61 = vld [vmem:[%s972_s9] sm:$0xff]  ;;  %v365_v5 = vld [vmem:[%s972_s9 + $0x28] sm:$0xff] }
  0x64   :  { %550 = vmatpush3.bf16.msra.mxu0 %v549_v7  ;;  %v564_v63 = vpack.c.bf16 %v361_v62, %v360_v61  ;;  %v364_v4 = vld [vmem:[%s972_s9 + $0x20] sm:$0xff]  ;;  %v366_v7 = vld [vmem:[%s972_s9 + $0x30] sm:$0xff]  ;;  %v469_v10 = vld [vmem:[#allocation7] ss:$0 sm:$0xff]  ;;  %p706_p2 = pnand %p705_p1, %p699_p12 }
  0x65   :  { %563 = vmatprep.subr.bf16.mxu0 %v733_v0  ;;  %v570_v6 = vpack.c.bf16 %v365_v5, %v364_v4 }
  0x66   :  { %556 = vmatpush3.bf16.msra.mxu1 %v555_v14 }
  0x67   :  { %505 = vmatmul.mubr.msk.f32.vlgmr.msra.gmra.mrb[0].mxu0 %vm111_vm1, %v97_v8  ;;  %557 = vmatprep.subr.bf16.mxu1 %v733_v0  ;;  %v367_v8 = vld [vmem:[%s972_s9 + $0x38] sm:$0xff] }
  0x68   :  { %542 = vmatprep.mubr.msk.f32.mxu0 %vm734_vm0, %v735_v1  ;;  %565 = vmatpush3.bf16.msra.mxu0 %v564_v63  ;;  %v362_v1 = vld [vmem:[%s972_s9 + $0x10] sm:$0xff]  ;;  %v573_v9 = vpack.c.bf16 %v367_v8, %v366_v7 }
  0x69   :  { %566 = vmatprep.subr.bf16.mxu0 %v733_v0  ;;  %v567_v3 = vpack.c.bf16 %v363_v2, %v362_v1 }
  0x6a   :  { %559 = vmatpush3.bf16.msra.mxu1 %v558_v17 }
  0x6b   :  { %560 = vmatprep.subr.bf16.mxu1 %v733_v0 }
  0x6c   :  { %568 = vmatpush3.bf16.msra.mxu0 %v567_v3 }
  0x6d   :  { %569 = vmatprep.subr.bf16.mxu0 %v733_v0 }
  0x6e   :  { %562 = vmatpush3.bf16.msra.mxu1 %v561_v20 }
  0x70   :  { %571 = vmatpush3.bf16.msra.mxu0 %v570_v6 }
  0x71   :  { %572 = vmatprep.subr.bf16.mxu0 %v733_v0 }
  0x74   :  { %574 = vmatpush3.bf16.msra.mxu0 %v573_v9 }
 0x13a   :  { %v181_v22 = vpop.f32.mrb[0].mxu0 }
 0x13b   :  { %v182_v23 = vadd.f32 %v467_v21, %v181_v22  ;;  %v506_v24 = vpop.f32.mrb[1].mxu0 }
 0x13d   :  { %vm185_vm2 = vcmp.ge.f32.partialorder %v182_v23, 0.0  ;;  %v186_v25 = vmul.f32 0.2, %v182_v23 }
 0x13f   :  { %v187_v26 = vsel %vm185_vm2, %v182_v23, %v186_v25 }
 0x140   :  { %v189_v27 = vsel %vm188_vm3, %v187_v26, 0.0  ;;  %v196_v28 = vmul.f32 %v187_v26, %v187_v26 }
 0x141   :  { %v190_v29 = vrot.slane %v189_v27, 4 }
 0x142   :  { %v197_v30 = vsel %vm188_vm3, %v196_v28, 0.0 }
 0x143   :  { %v191_v31 = vadd.f32 %v190_v29, %v189_v27  ;;  %v198_v32 = vrot.slane %v197_v30, 4 }
 0x145   :  { %v192_v33 = vrot.slane %v191_v31, 2  ;;  %v199_v34 = vadd.f32 %v198_v32, %v197_v30 }
 0x147   :  { %v193_v35 = vadd.f32 %v192_v33, %v191_v31  ;;  %v200_v36 = vrot.slane %v199_v34, 2 }
 0x149   :  { %v194_v37 = vrot.slane %v193_v35, 1  ;;  %v201_v38 = vadd.f32 %v200_v36, %v199_v34  ;;  %v237_v36 = vld [vmem:[#allocation8] sm:$0x1] }
 0x14b   :  { %v195_v39 = vadd.f32 %v194_v37, %v193_v35  ;;  %v202_v40 = vrot.slane %v201_v38, 1 }
 0x14d   :  { %v203_v41 = vadd.f32 %v202_v40, %v201_v38  ;;  %v204_v42 = vmul.f32 0.125, %v195_v39  ;;  %v238_v39 = vld [vmem:[#allocation10] sm:$0x1] }
 0x14f   :  { %v205_v43 = vmul.f32 0.125, %v203_v41  ;;  %v206_v44 = vmul.f32 %v204_v42, %v204_v42 }
 0x151   :  { %v207_v45 = vsub.f32 %v205_v43, %v206_v44 }
 0x153   :  { %v208_v46 = vmax.f32 %v207_v45, 0.0 }
 0x155   :  { %v209_v47 = vadd.f32 1e-05, %v208_v46  ;;  %v471_v46 = vld [vmem:[%s973_s10] ss:$0 sm:$0xff] }
 0x157   :  { %584 = vrsqrt.f32 %v209_v47 }
 0x161   :  { %v585_v52 = vpop.eup %584 }
 0x162   :  { %v211_v53 = vmul.f32 %v585_v52, %v103_v50 }
 0x164   :  { %v212_v55 = vmul.f32 %v211_v53, %v204_v42  ;;  %v218_v56 = vrot.slane %v211_v53, %v911_v51 }
 0x166   :  { %v213_v57 = vsub.f32 %v104_v54, %v212_v55  ;;  %v220_v58 = vmul.f32 %v218_v56, %v187_v26 }
 0x168   :  { %v225_v59 = vrot.slane %v213_v57, %v911_v51 }
 0x16a   :  { %v227_v60 = vadd.f32 %v225_v59, %v220_v58 }
 0x16c   :  { %524 = vmatmul.mubr.msk.f32.vlgmr.msra.gmra.mrb[0].mxu1 %vm188_vm3, %v227_v60 }
 0x23f   :  { %v314_v11 = vpop.f32.mrb[0].mxu1 }
 0x240   :  { %v315_v12 = vadd.f32 %v469_v10, %v314_v11  ;;  %v525_v13 = vpop.f32.mrb[1].mxu1 }
 0x242   :  { %vm318_vm4 = vcmp.ge.f32.partialorder %v315_v12, 0.0  ;;  %v319_v14 = vmul.f32 0.2, %v315_v12 }
 0x244   :  { %v320_v15 = vsel %vm318_vm4, %v315_v12, %v319_v14 }
 0x245   :  { %v321_v16 = vsel %vm188_vm3, %v320_v15, 0.0  ;;  %v328_v0 = vmul.f32 %v320_v15, %v320_v15 }
 0x246   :  { %v322_v17 = vrot.slane %v321_v16, 4 }
 0x247   :  { %v329_v18 = vsel %vm188_vm3, %v328_v0, 0.0 }
 0x248   :  { %v323_v19 = vadd.f32 %v322_v17, %v321_v16  ;;  %v330_v20 = vrot.slane %v329_v18, 4 }
 0x24a   :  { %v324_v21 = vrot.slane %v323_v19, 2  ;;  %v331_v22 = vadd.f32 %v330_v20, %v329_v18 }
 0x24c   :  { %v325_v23 = vadd.f32 %v324_v21, %v323_v19  ;;  %v332_v24 = vrot.slane %v331_v22, 2 }
 0x24e   :  { %v326_v25 = vrot.slane %v325_v23, 1  ;;  %v333_v26 = vadd.f32 %v332_v24, %v331_v22 }
 0x250   :  { %v327_v27 = vadd.f32 %v326_v25, %v325_v23  ;;  %v334_v28 = vrot.slane %v333_v26, 1 }
 0x252   :  { %v335_v29 = vadd.f32 %v334_v28, %v333_v26  ;;  %v336_v30 = vmul.f32 0.125, %v327_v27 }
 0x254   :  { %v337_v31 = vmul.f32 0.125, %v335_v29  ;;  %v338_v32 = vmul.f32 %v336_v30, %v336_v30 }
 0x256   :  { %v339_v33 = vsub.f32 %v337_v31, %v338_v32 }
 0x258   :  { %v340_v34 = vmax.f32 %v339_v33, 0.0 }
 0x25a   :  { %v341_v35 = vadd.f32 1e-05, %v340_v34 }
 0x25c   :  { %586 = vrsqrt.f32 %v341_v35 }
 0x266   :  { %v587_v37 = vpop.eup %586 }
 0x267   :  { %v343_v38 = vmul.f32 %v587_v37, %v237_v36 }
 0x269   :  { %v344_v40 = vmul.f32 %v343_v38, %v336_v30  ;;  %v350_v41 = vrot.slane %v343_v38, %v911_v51 }
 0x26b   :  { %v345_v42 = vsub.f32 %v238_v39, %v344_v40  ;;  %v352_v43 = vmul.f32 %v350_v41, %v320_v15 }
 0x26d   :  { %v357_v44 = vrot.slane %v345_v42, %v911_v51 }
 0x26f   :  { %v359_v45 = vadd.f32 %v357_v44, %v352_v43 }
 0x271   :  { %543 = vmatmul.mubr.msk.f32.vlgmr.msra.gmra.mrb[2].mxu0 %vm188_vm3, %v359_v45 }
 0x344   :  { %v444_v47 = vpop.f32.mrb[2].mxu0 }
 0x345   :  { %v445_v48 = vadd.f32 %v471_v46, %v444_v47  ;;  %v544_v49 = vpop.f32.mrb[3].mxu0 }
 0x347   :  { %449 = vst.msk [vmem:[#allocation11] sm:$0xff] %vm448_vm5, %v445_v48 }
 0x348   :  { %709 = shalt.err (!%p706_p2)
}
 0x349   :  { %s710_s6 = scalar_lea.hbm %s974_s11, 128 }
 0x34a   :  { %p711_p3 = scmp.ne.s32.totalorder %s974_s11, %s710_s6  ;;  %p714_p4 = scmp.lt.u32.totalorder %s710_s6, %s974_s11 }
 0x34c   :  { %p716_p5 = pnand %p714_p4, %p711_p3 }
 0x34e   :  { %719 = shalt.err (!%p716_p5)
}
 0x34f   :  { %459 = dma.vmem_to_hbm [thread:$0]  %s457_s15, 128, %s974_s11, [#allocation4]  }
 0x350   :  { %726 = dma.done.wait [#allocation4], 128  }
 0x351   :  { %727 = vsyncadd [#allocation4], 4294967168 }
 0x352   :  { %463 = vsyncpa [#allocation3], 1 }
 0x353   :  { %464 = vsyncpa [#allocation6], 1 }
 0x354   :  { %465 = vsyncpa [#allocation9], 1 }
 0x355   :  { %466 = vsyncpa [#allocation4], 1 }

</bundles_post_ra>
